<compile_context>
chip_gen: v7x
topology: tpu7x:2x2x1
jax: 0.10.0
libtpu: 0.0.40
codegen_flags: <defaults>
</compile_context>

<pallas_src>
import functools

import jax
import jax.numpy as jnp
from jax.experimental import pallas as pl
from jax.experimental.pallas import tpu as pltpu


def _round_up(x: int, m: int) -> int:
    return ((x + m - 1) // m) * m


def _sublane_multiple(dtype) -> int:
    # Sub-32-bit dtypes pack 2x/4x along sublanes.
    return {4: 8, 2: 16, 1: 32}.get(jnp.dtype(dtype).itemsize, 8)


def _pick_tile(dim_padded: int, candidates=(512, 256, 128)) -> int:
    for c in candidates:
        if dim_padded % c == 0:
            return c
    return dim_padded  # dim_padded is always a multiple of 128 here


_VMEM_BUDGET = 40 * 1024 * 1024   # working-set budget (fits v7x's 64 MiB VMEM)
_VMEM_LIMIT = 48 * 1024 * 1024    # explicit scoped-VMEM limit for the kernel


# ---------------------------------------------------------------------------
# Kernels
# ---------------------------------------------------------------------------
def _linear_kernel_f32(x_ref, w_ref, b_ref, o_ref):
    """f32 output: accumulate directly into the K-resident output block."""
    k = pl.program_id(2)
    partial = jnp.dot(x_ref[...], w_ref[...], preferred_element_type=jnp.float32)

    @pl.when(k == 0)
    def _():
        o_ref[...] = partial + b_ref[...]          # fold bias into first step

    @pl.when(k > 0)
    def _():
        o_ref[...] += partial


def _linear_kernel_acc(x_ref, w_ref, b_ref, o_ref, acc_ref):
    """Sub-f32 output: accumulate in f32 scratch, single cast in the epilogue."""
    k = pl.program_id(2)
    partial = jnp.dot(x_ref[...], w_ref[...], preferred_element_type=jnp.float32)

    @pl.when(k == 0)
    def _():
        acc_ref[...] = partial

    @pl.when(k > 0)
    def _():
        acc_ref[...] += partial

    @pl.when(k == pl.num_programs(2) - 1)
    def _():
        o_ref[...] = (acc_ref[...] + b_ref[...]).astype(o_ref.dtype)


# ---------------------------------------------------------------------------
# Jitted pad -> pallas_call -> slice
# ---------------------------------------------------------------------------
@functools.partial(
    jax.jit,
    static_argnames=("tm", "tn", "tk", "out_dtype", "compute_dtype", "n_valid"),
)
def _linear_padded(x, wp_t, bp, *, tm, tn, tk, out_dtype, compute_dtype, n_valid):
    B, K = x.shape
    Kp, Np = wp_t.shape
    Mp = _round_up(B, tm)

    xp = x.astype(compute_dtype)
    if Mp != B or Kp != K:
        xp = jnp.pad(xp, ((0, Mp - B), (0, Kp - K)))

    f32_out = jnp.dtype(out_dtype) == jnp.float32
    kernel = _linear_kernel_f32 if f32_out else _linear_kernel_acc
    scratch = [] if f32_out else [pltpu.VMEM((tm, tn), jnp.float32)]

    x_isz = jnp.dtype(compute_dtype).itemsize
    w_isz = wp_t.dtype.itemsize
    o_isz = jnp.dtype(out_dtype).itemsize
    cost = pl.CostEstimate(
        flops=2 * Mp * Np * Kp,
        transcendentals=0,
        bytes_accessed=Mp * Kp * x_isz + Kp * Np * w_isz + Mp * Np * o_isz,
    )

    out = pl.pallas_call(
        kernel,
        out_shape=jax.ShapeDtypeStruct((Mp, Np), out_dtype),
        grid=(Mp // tm, Np // tn, Kp // tk),
        in_specs=[
            pl.BlockSpec((tm, tk), lambda i, j, k: (i, k)),   # x        (Mp, Kp)
            pl.BlockSpec((tk, tn), lambda i, j, k: (k, j)),   # weight.T (Kp, Np)
            pl.BlockSpec((1, tn), lambda i, j, k: (0, j)),    # bias     (1, Np)
        ],
        out_specs=pl.BlockSpec((tm, tn), lambda i, j, k: (i, j)),
        scratch_shapes=scratch,
        compiler_params=pltpu.CompilerParams(
            dimension_semantics=("parallel", "parallel", "arbitrary"),
            vmem_limit_bytes=_VMEM_LIMIT,
        ),
        cost_estimate=cost,
    )(xp, wp_t, bp)

    if Mp != B or Np != n_valid:
        out = out[:B, :n_valid]
    return out


# ---------------------------------------------------------------------------
# Module-like wrapper: prepare parameters once, apply many times
# ---------------------------------------------------------------------------
def make_linear(weight, bias, *, compute_dtype=None):
    """PyTorch layout: weight (out_dim, in_dim), bias (out_dim,).

    Transposes / pads / casts the parameters ONCE and returns a callable
    x -> x @ weight.T + bias.
    """
    N, K = weight.shape
    assert bias.shape == (N,)
    if compute_dtype is None:
        compute_dtype = weight.dtype
    compute_dtype = jnp.dtype(compute_dtype)
    out_dtype = jnp.dtype(weight.dtype)

    Np = _round_up(N, 128)
    Kp = _round_up(K, 128)
    tn = _pick_tile(Np)
    tk = _pick_tile(Kp)

    # Pre-transpose to (K, N) so the kernel is a native (tm,tk)x(tk,tn) matmul.
    wp_t = jnp.pad(weight.T.astype(compute_dtype), ((0, Kp - K), (0, Np - N)))
    # Bias stays f32 for the f32 accumulate; padded to lane width once.
    bp = jnp.pad(bias.astype(jnp.float32), (0, Np - N)).reshape(1, Np)

    x_isz = compute_dtype.itemsize
    w_isz = compute_dtype.itemsize
    o_isz = out_dtype.itemsize
    need_acc = out_dtype != jnp.dtype(jnp.float32)
    sub = _sublane_multiple(compute_dtype)

    def _working_set(tm_):
        return (2 * tm_ * tk * x_isz        # x double buffer
                + 2 * tk * tn * w_isz       # weight double buffer
                + 2 * tm_ * tn * o_isz      # output double buffer
                + (tm_ * tn * 4 if need_acc else 0))

    def apply(x):
        B, Kx = x.shape
        assert Kx == K, (Kx, K)
        # Cover all of (padded) M in one block where VMEM allows -> weight
        # streams from HBM exactly once.
        tm = min(_round_up(B, sub), 1024)
        while _working_set(tm) > _VMEM_BUDGET and tm > sub:
            tm = max(_round_up(tm // 2, sub), sub)
        return _linear_padded(
            x, wp_t, bp,
            tm=tm, tn=tn, tk=tk,
            out_dtype=out_dtype.name,
            compute_dtype=compute_dtype.name,
            n_valid=N,
        )

    return apply


if __name__ == "__main__":
    # Shapes consistent with the module: input_dimension=32, output_dimension=64
    batch, in_dim, out_dim = 8, 32, 64

    key = jax.random.PRNGKey(0)
    kx, kw, kb = jax.random.split(key, 3)

    x = jax.random.normal(kx, (batch, in_dim), dtype=jnp.float32)
    # Mimic nn.Linear uniform(-1/sqrt(K), 1/sqrt(K)) init.
    bound = 1.0 / (in_dim ** 0.5)
    weight = jax.random.uniform(kw, (out_dim, in_dim), jnp.float32, -bound, bound)
    bias = jax.random.uniform(kb, (out_dim,), jnp.float32, -bound, bound)

    # 1) f32 path (exact nn.Linear semantics).
    linear = make_linear(weight, bias)
    out = linear(x)
    jax.block_until_ready(out)
    ref = x @ weight.T + bias
    assert out.shape == (batch, out_dim)
    assert jnp.allclose(out, ref, atol=1e-5, rtol=1e-5)

    # 2) Multi-block path: exercises accumulation across the K grid axis and
    #    multiple N blocks (grid (1, 3, 5)).
    in2, out2, b2 = 640, 384, 16
    k2x, k2w, k2b = jax.random.split(jax.random.PRNGKey(1), 3)
    bnd2 = 1.0 / (in2 ** 0.5)
    x2 = jax.random.normal(k2x, (b2, in2), dtype=jnp.float32)
    w2 = jax.random.uniform(k2w, (out2, in2), jnp.float32, -bnd2, bnd2)
    bb2 = jax.random.uniform(k2b, (out2,), jnp.float32, -bnd2, bnd2)
    out2v = make_linear(w2, bb2)(x2)
    jax.block_until_ready(out2v)
    ref2 = x2 @ w2.T + bb2
    assert jnp.allclose(out2v, ref2, atol=2e-4, rtol=2e-4)

    # 3) bf16 compute path (perf config: bf16 MXU inputs, f32 accumulate).
    linear_bf16 = make_linear(
        weight.astype(jnp.bfloat16), bias.astype(jnp.bfloat16),
        compute_dtype=jnp.bfloat16,
    )
    out_bf16 = linear_bf16(x.astype(jnp.bfloat16))
    jax.block_until_ready(out_bf16)
    assert jnp.allclose(out_bf16.astype(jnp.float32), ref, atol=2e-2, rtol=2e-2)

    print("KERNEL_OK")
</pallas_src>

<mosaic_0001>
module attributes {stable_mosaic.version = 11 : i64} {
  func.func @_linear_kernel_f32(%arg0: i32, %arg1: i32, %arg2: i32, %arg3: memref<8x128xf32, #tpu.memory_space<vmem>>, %arg4: memref<128x128xf32, #tpu.memory_space<vmem>>, %arg5: memref<1x128xf32, #tpu.memory_space<vmem>>, %arg6: memref<8x128xf32, #tpu.memory_space<vmem>>) attributes {dimension_semantics = [#tpu.dimension_semantics<parallel>, #tpu.dimension_semantics<parallel>, #tpu.dimension_semantics<arbitrary>], iteration_bounds = array<i64: 1, 1, 1>, scalar_prefetch = 0 : i64, scratch_operands = 0 : i64, tpu.core_type = #tpu.core_type<tc>, window_params = [{transform_indices = @transform_0, window_bounds = array<i64: 8, 128>}, {transform_indices = @transform_1, window_bounds = array<i64: 128, 128>}, {transform_indices = @transform_2, window_bounds = array<i64: 1, 128>}, {transform_indices = @transform_3, window_bounds = array<i64: 8, 128>}]} {
    %c0 = arith.constant 0 : index
    %c0_0 = arith.constant 0 : index
    %0 = vector.load %arg3[%c0, %c0_0] : memref<8x128xf32, #tpu.memory_space<vmem>>, vector<8x128xf32>
    %c0_1 = arith.constant 0 : index
    %c0_2 = arith.constant 0 : index
    %1 = vector.load %arg4[%c0_1, %c0_2] : memref<128x128xf32, #tpu.memory_space<vmem>>, vector<128x128xf32>
    %cst = arith.constant dense<0.000000e+00> : vector<8x128xf32>
    %2 = tpu.matmul %0, %1, %cst {dimension_numbers = #tpu.dot_dimension_numbers<[1], [0], [0], [1], [0, 0, 1, 1], [], []>} : vector<8x128xf32>, vector<128x128xf32>, vector<8x128xf32> -> vector<8x128xf32>
    %c0_i32 = arith.constant 0 : i32
    %3 = arith.cmpi eq, %arg2, %c0_i32 : i32
    %4 = arith.extui %3 : i1 to i32
    %c0_i32_3 = arith.constant 0 : i32
    %5 = arith.cmpi ne, %4, %c0_i32_3 : i32
    scf.if %5 {
      %c0_6 = arith.constant 0 : index
      %c0_7 = arith.constant 0 : index
      %9 = vector.load %arg5[%c0_6, %c0_7] : memref<1x128xf32, #tpu.memory_space<vmem>>, vector<1x128xf32>
      %10 = vector.broadcast %9 : vector<1x128xf32> to vector<8x128xf32>
      %11 = arith.addf %2, %10 : vector<8x128xf32>
      %c0_8 = arith.constant 0 : index
      %c0_9 = arith.constant 0 : index
      %12 = vector.load %arg6[%c0_8, %c0_9] : memref<8x128xf32, #tpu.memory_space<vmem>>, vector<8x128xf32>
      tpu.vector_store %arg6[%c0_8, %c0_9], %11 {strides = array<i32>} : memref<8x128xf32, #tpu.memory_space<vmem>>, vector<8x128xf32>,
    } else {
    }
    %c0_i32_4 = arith.constant 0 : i32
    %6 = arith.cmpi sgt, %arg2, %c0_i32_4 : i32
    %7 = arith.extui %6 : i1 to i32
    %c0_i32_5 = arith.constant 0 : i32
    %8 = arith.cmpi ne, %7, %c0_i32_5 : i32
    scf.if %8 {
      %c0_6 = arith.constant 0 : index
      %c0_7 = arith.constant 0 : index
      %9 = vector.load %arg6[%c0_6, %c0_7] : memref<8x128xf32, #tpu.memory_space<vmem>>, vector<8x128xf32>
      %10 = arith.addf %9, %2 : vector<8x128xf32>
      %c0_8 = arith.constant 0 : index
      %c0_9 = arith.constant 0 : index
      %11 = vector.load %arg6[%c0_8, %c0_9] : memref<8x128xf32, #tpu.memory_space<vmem>>, vector<8x128xf32>
      tpu.vector_store %arg6[%c0_8, %c0_9], %10 {strides = array<i32>} : memref<8x128xf32, #tpu.memory_space<vmem>>, vector<8x128xf32>,
    } else {
    }
    return
  }
  func.func @transform_0(%arg0: i32, %arg1: i32, %arg2: i32) -> (i32, i32) {
    %c0_i32 = arith.constant 0 : i32
    return %arg0, %arg2 : i32, i32
  }
  func.func @transform_1(%arg0: i32, %arg1: i32, %arg2: i32) -> (i32, i32) {
    %c0_i32 = arith.constant 0 : i32
    return %arg2, %arg1 : i32, i32
  }
  func.func @transform_2(%arg0: i32, %arg1: i32, %arg2: i32) -> (i32, i32) {
    %c0_i32 = arith.constant 0 : i32
    %c0_i32_0 = arith.constant 0 : i32
    return %c0_i32, %arg1 : i32, i32
  }
  func.func @transform_3(%arg0: i32, %arg1: i32, %arg2: i32) -> (i32, i32) {
    %c0_i32 = arith.constant 0 : i32
    return %arg0, %arg1 : i32, i32
  }
}

</mosaic_0001>

<bundles_post_ra>
// kernel: _linear_padded.1
= control target key start
LH: loop header
LB: loop body
LE: loop exit
PB: predicated region body
PF: predicated region fallthrough
CT: control target
= control target key end

     0   :  { %8 = vsyncpa [#allocation3], 0  ;;  %s340_s0 = inlined_call_operand.vmem [shape: f32[8,128], index: 0, kind: input, shape index: {}]   ;;  %s341_s1 = inlined_call_operand.hbm [shape: f32[128,128], index: 1, kind: input, shape index: {}]   ;;  %s342_s2 = inlined_call_operand.vmem [shape: f32[1,128], index: 2, kind: input, shape index: {}]   ;;  %s343_s3 = inlined_call_operand.hbm [shape: f32[8,128], index: 3, kind: output, shape index: {}]  }
   0x1   :  { %9 = vsyncpa [#allocation4], 0  ;;  %s283_s12 = smov [#allocation2]   ;;  %s235_s16 = scalar_lea.hbm %s341_s1, 2048 }
   0x2   :  { %s17_s13 = sshll.u32 %s283_s12, 4  ;;  %p236_p0 = scmp.ne.s32.totalorder %s341_s1, %s235_s16  ;;  %s18_s13 = int_to_ptr.vmem [resolvable:$true] %s17_s13 }
   0x3   :  { %p239_p1 = scmp.lt.u32.totalorder %s235_s16, %s341_s1 }
   0x5   :  { %p241_p2 = pnand %p239_p1, %p236_p0 }
   0x7   :  { %244 = shalt.err (!%p241_p2)
}
   0x8   :  { %s245_s21 = scalar_lea.vmem %s18_s13, 2048  ;;  %p250_p4 = scmp.lt.s32.totalorder %s18_s13, %s18_s13 }
   0x9   :  { %p246_p3 = scmp.ne.s32.totalorder %s18_s13, %s245_s21  ;;  %p251_p5 = scmp.lt.s32.totalorder %s245_s21, %s245_s21 }
   0xb   :  { %p252_p6 = por %p251_p5, %p250_p4 }
   0xd   :  { %p253_p7 = pnand %p252_p6, %p246_p3 }
   0xf   :  { %256 = shalt.err (!%p253_p7)
}
  0x10   :  { %s284_s22 = smov 128   ;;  %s285_s23 = smov 8  }
  0x11   :  { %23 = dma.hbm_to_vmem [thread:$0]  %s341_s1, 2048, %s18_s13, [#allocation3], %s284_s22, %s284_s22, %s285_s23  }
  0x12   :  { %279 = dma.done.wait [#allocation3], 2048  }
  0x13   :  { %280 = vsyncadd [#allocation3], 4294965248  ;;  %v286_v0 = vmov 0.0|0.0   ;;  %vm287_vm0 = vmmov 0   ;;  %v288_v1 = vmov 0.0   ;;  %v30_v2 = vld [vmem:[#allocation2] sm:$0xff] }
  0x14   :  { %204 = vmatprep.subr.bf16.mxu0 %v286_v0  ;;  %201 = vmatprep.mubr.msk.f32.mxu0 %vm287_vm0, %v288_v1  ;;  %v31_v3 = vld [vmem:[#allocation2 + $0x8] sm:$0xff]  ;;  %v32_v4 = vld [vmem:[#allocation2 + $0x10] sm:$0xff]  ;;  %v33_v6 = vld [vmem:[#allocation2 + $0x18] sm:$0xff]  ;;  %s289_s29 = smov [#allocation5]  }
  0x15   :  { %v205_v5 = vpack.c.bf16 %v31_v3, %v30_v2  ;;  %v208_v7 = vpack.c.bf16 %v33_v6, %v32_v4  ;;  %v34_v8 = vld [vmem:[#allocation2 + $0x20] sm:$0xff]  ;;  %v35_v9 = vld [vmem:[#allocation2 + $0x28] sm:$0xff]  ;;  %v36_v11 = vld [vmem:[#allocation2 + $0x30] sm:$0xff]  ;;  %s142_s30 = sshll.u32 %s289_s29, 4  ;;  %s143_s30 = int_to_ptr.vmem [resolvable:$true] %s142_s30 }
  0x16   :  { %v211_v10 = vpack.c.bf16 %v35_v9, %v34_v8  ;;  %v37_v12 = vld [vmem:[#allocation2 + $0x38] sm:$0xff]  ;;  %v38_v14 = vld [vmem:[#allocation2 + $0x40] sm:$0xff]  ;;  %v39_v15 = vld [vmem:[#allocation2 + $0x48] sm:$0xff]  ;;  %s257_s4 = scalar_lea.vmem %s143_s30, 128  ;;  %p262_p9 = scmp.lt.s32.totalorder %s143_s30, %s143_s30 }
  0x17   :  { %206 = vmatpush3.bf16.msra.mxu0 %v205_v5  ;;  %v214_v13 = vpack.c.bf16 %v37_v12, %v36_v11  ;;  %v217_v16 = vpack.c.bf16 %v39_v15, %v38_v14  ;;  %v40_v17 = vld [vmem:[#allocation2 + $0x50] sm:$0xff]  ;;  %v41_v18 = vld [vmem:[#allocation2 + $0x58] sm:$0xff]  ;;  %v42_v20 = vld [vmem:[#allocation2 + $0x60] sm:$0xff]  ;;  %p258_p8 = scmp.ne.s32.totalorder %s143_s30, %s257_s4  ;;  %p263_p10 = scmp.lt.s32.totalorder %s257_s4, %s257_s4 }
  0x18   :  { %207 = vmatprep.subr.bf16.mxu0 %v286_v0  ;;  %v220_v19 = vpack.c.bf16 %v41_v18, %v40_v17  ;;  %v43_v21 = vld [vmem:[#allocation2 + $0x68] sm:$0xff]  ;;  %v44_v23 = vld [vmem:[#allocation2 + $0x70] sm:$0xff]  ;;  %v45_v24 = vld [vmem:[#allocation2 + $0x78] sm:$0xff] }
  0x19   :  { %v223_v22 = vpack.c.bf16 %v43_v21, %v42_v20  ;;  %v226_v25 = vpack.c.bf16 %v45_v24, %v44_v23  ;;  %v29_v26 = vld [vmem:[%s340_s0] sm:$0xff]  ;;  %p264_p11 = por %p263_p10, %p262_p9 }
  0x1a   :  { %v151_v27 = vld [vmem:[%s342_s2] ss:$0 sm:$0xff] }
  0x1b   :  { %209 = vmatpush3.bf16.msra.mxu0 %v208_v7  ;;  %p265_p12 = pnand %p264_p11, %p258_p8 }
  0x1c   :  { %210 = vmatprep.subr.bf16.mxu0 %v286_v0 }
  0x1f   :  { %212 = vmatpush3.bf16.msra.mxu0 %v211_v10 }
  0x20   :  { %213 = vmatprep.subr.bf16.mxu0 %v286_v0 }
  0x23   :  { %215 = vmatpush3.bf16.msra.mxu0 %v214_v13 }
  0x24   :  { %216 = vmatprep.subr.bf16.mxu0 %v286_v0 }
  0x27   :  { %218 = vmatpush3.bf16.msra.mxu0 %v217_v16 }
  0x28   :  { %219 = vmatprep.subr.bf16.mxu0 %v286_v0 }
  0x2b   :  { %221 = vmatpush3.bf16.msra.mxu0 %v220_v19 }
  0x2c   :  { %222 = vmatprep.subr.bf16.mxu0 %v286_v0 }
  0x2f   :  { %224 = vmatpush3.bf16.msra.mxu0 %v223_v22 }
  0x30   :  { %225 = vmatprep.subr.bf16.mxu0 %v286_v0 }
  0x33   :  { %227 = vmatpush3.bf16.msra.mxu0 %v226_v25 }
  0x36   :  { %202 = vmatmul.mubr.f32.vlgmr.msra.gmra.mrb[0].mxu0 %v29_v26 }
 0x109   :  { %v112_v28 = vpop.f32.mrb[0].mxu0 }
 0x10a   :  { %v127_v29 = vadd.f32 %v151_v27, %v112_v28  ;;  %v203_v30 = vpop.f32.mrb[1].mxu0 }
 0x10c   :  { %128 = vst [vmem:[#allocation5] sm:$0xff] %v127_v29 }
 0x10d   :  { %268 = shalt.err (!%p265_p12)
}
 0x10e   :  { %s269_s6 = scalar_lea.hbm %s343_s3, 128 }
 0x10f   :  { %p270_p13 = scmp.ne.s32.totalorder %s343_s3, %s269_s6  ;;  %p273_p0 = scmp.lt.u32.totalorder %s269_s6, %s343_s3 }
 0x111   :  { %p275_p1 = pnand %p273_p0, %p270_p13 }
 0x113   :  { %278 = shalt.err (!%p275_p1)
}
 0x114   :  { %145 = dma.vmem_to_hbm [thread:$0]  %s143_s30, 128, %s343_s3, [#allocation4]  }
 0x115   :  { %281 = dma.done.wait [#allocation4], 128  }
 0x116   :  { %282 = vsyncadd [#allocation4], 4294967168 }
 0x117   :  { %149 = vsyncpa [#allocation3], 1 }
 0x118   :  { %150 = vsyncpa [#allocation4], 1 }

</bundles_post_ra>
